<compile_context>
chip_gen: v6e
topology: v6e:2x2x1
jax: 0.10.0
libtpu: 0.0.40
codegen_flags: <defaults>
</compile_context>

<pallas_src>
import functools
import math

import jax
import jax.numpy as jnp
from jax import lax
from jax.experimental import pallas as pl
from jax.experimental.pallas import tpu as pltpu

HIDDEN_DIM = 128   # k/q projection width
INPUT_DIM = 768    # key/value feature width
OUT_DIM = 50       # v projection width (module output width)
OUT_PAD = 128      # v projection padded to a full lane tile (sliced in wrapper)
NEG_BIG = -1e30    # plain Python float: becomes a literal, not a captured const


def _attention_kernel(key_ref, value_ref, wkq_ref, mask_ref, colid_ref, wv_ref,
                      out_ref, *, bm, rows):
    """One grid step: `bm` batch elements, `rows = bm * isl_p` key/value rows."""
    # Scores directly in (bm, rows) orientation: one MXU call (contract on the
    # 768 axis of both operands), no f32 result transpose.
    s = lax.dot_general(
        wkq_ref[0], key_ref[...],
        dimension_numbers=(((1,), (1,)), ((), ())),
        preferred_element_type=jnp.float32)                     # (bm, rows)
    s = s + mask_ref[0]                                         # additive user mask

    # Keep only each batch element's own key positions (block diagonal).
    row_b = lax.broadcasted_iota(jnp.int32, (bm, rows), 0)
    s = jnp.where(row_b == colid_ref[...], s, NEG_BIG)

    # Softmax over the flattened key axis (off-block entries underflow to 0).
    s = s - jnp.max(s, axis=-1, keepdims=True)
    p = jnp.exp(s)
    p = p * pl.reciprocal(jnp.sum(p, axis=-1, keepdims=True), approx=True)
    p16 = p.astype(jnp.bfloat16)

    if bm <= 128:
        # (P @ V) @ Wv: bm*rows*768 + bm*768*128 MACs, tiny (bm,768) temp.
        vbar = jnp.dot(p16, value_ref[...], preferred_element_type=jnp.float32)
        out_ref[...] = jnp.dot(vbar.astype(jnp.bfloat16), wv_ref[...],
                               preferred_element_type=jnp.float32)
    else:
        # P @ (V @ Wv): cheaper when bm is large.
        vproj = jnp.dot(value_ref[...], wv_ref[...],
                        preferred_element_type=jnp.float32)     # (rows, OUT_PAD)
        out_ref[...] = jnp.dot(p16, vproj.astype(jnp.bfloat16),
                               preferred_element_type=jnp.float32)


def attention_pallas(key, query, value, mask, wk, wq, wv, *,
                     block_rows=2048, block_batch=128):
    """key: (B,ISL,768)  query: (B,1,50)  value: (B,ISL,768)  mask: (B,ISL).

    wk: (768,128), wq: (50,128), wv: (768,50) stored as (in_dim, out_dim),
    i.e. the transpose of the corresponding torch.nn.Linear.weight.
    """
    B, ISL, _ = key.shape
    f32 = jnp.float32

    # Fold q-projection, k-projection and the 1/sqrt(hidden) scale into one
    # per-batch 768-vector:  scores[b,s] = key[b,s,:] . wkq[b,:].
    w_qk = (wq @ wk.T) * (1.0 / math.sqrt(HIDDEN_DIM))          # (50, 768)
    wkq = query.reshape(B, OUT_DIM).astype(f32) @ w_qk          # (B, 768)

    # Tile sizes: `bm` batches per grid step, sequence padded to a sublane tile.
    isl_p = pl.cdiv(ISL, 8) * 8
    bm = max(1, block_rows // isl_p)
    bm = min(bm, block_batch)
    if bm >= B:
        if B <= 8:
            bm = B                                   # blocks == full array dims
        else:
            # Cap at ~ceil(B/2) (sublane-aligned) so grid >= 2 -> both v7x TCs.
            bm = max(8, pl.cdiv(pl.cdiv(B, 2), 8) * 8)
    else:
        bm = max(8, (bm // 8) * 8)                   # sublane-aligned batch block
    grid = pl.cdiv(B, bm)
    b_pad = grid * bm
    rows = bm * isl_p
    # TODO(synk): for very long ISL (where even bm=8 makes the streamed block
    # exceed the VMEM budget) the sequence axis itself should be tiled with an
    # online softmax; not needed for the shapes this module is used with.

    def pad_axis(x, size, axis, value=0.0):
        if x.shape[axis] == size:
            return x
        widths = [(0, 0)] * x.ndim
        widths[axis] = (0, size - x.shape[axis])
        return jnp.pad(x, widths, constant_values=value)

    key_p = pad_axis(pad_axis(key, isl_p, 1), b_pad, 0)
    val_p = pad_axis(pad_axis(value, isl_p, 1), b_pad, 0)
    mask_p = pad_axis(mask.astype(f32), isl_p, 1, value=NEG_BIG)  # padded seq masked out
    mask_p = pad_axis(mask_p, b_pad, 0, value=0.0)                # padded batch harmless
    wkq_p = pad_axis(wkq, b_pad, 0)

    key2d = key_p.reshape(b_pad * isl_p, INPUT_DIM).astype(jnp.bfloat16)
    val2d = val_p.reshape(b_pad * isl_p, INPUT_DIM).astype(jnp.bfloat16)
    wkq3 = wkq_p.reshape(grid, bm, INPUT_DIM).astype(jnp.bfloat16)
    mask3 = mask_p.reshape(grid, 1, rows)
    colid = (jnp.arange(rows, dtype=jnp.int32) // isl_p).reshape(1, rows)
    wv_pad = jnp.pad(wv, ((0, 0), (0, OUT_PAD - OUT_DIM))).astype(jnp.bfloat16)

    # VMEM budget derived from the actual per-step footprint (double-buffered
    # streams + resident weights + intermediates + slack); safe on v7x (64 MiB)
    # and leaves headroom to raise block_rows on v5e/v6e (128 MiB).
    vmem_need = (
        2 * 2 * rows * INPUT_DIM * 2          # key + value blocks, bf16, 2 buffers
        + 2 * bm * INPUT_DIM * 2              # folded query vectors
        + 2 * rows * 4 + 2 * rows * 4         # mask (f32) + column batch ids (i32)
        + 2 * INPUT_DIM * OUT_PAD * 2         # Wv (bf16)
        + 2 * bm * OUT_PAD * 4                # output block
        + 4 * bm * rows * 4                   # score / prob / iota temporaries
        + (4 << 20))                          # compiler scratch slack
    vmem_limit = int(min(max(vmem_need, 16 << 20), 100 << 20))

    out = pl.pallas_call(
        functools.partial(_attention_kernel, bm=bm, rows=rows),
        out_shape=jax.ShapeDtypeStruct((b_pad, OUT_PAD), f32),
        grid_spec=pltpu.PrefetchScalarGridSpec(
            num_scalar_prefetch=0,
            grid=(grid,),
            in_specs=[
                pl.BlockSpec((rows, INPUT_DIM), lambda g: (g, 0)),      # key (flattened)
                pl.BlockSpec((rows, INPUT_DIM), lambda g: (g, 0)),      # value (flattened)
                pl.BlockSpec((1, bm, INPUT_DIM), lambda g: (g, 0, 0)),  # folded query vecs
                pl.BlockSpec((1, 1, rows), lambda g: (g, 0, 0)),        # additive user mask
                pl.BlockSpec((1, rows), lambda g: (0, 0)),              # column batch ids
                pl.BlockSpec((INPUT_DIM, OUT_PAD), lambda g: (0, 0)),   # Wv (padded)
            ],
            out_specs=pl.BlockSpec((bm, OUT_PAD), lambda g: (g, 0)),
        ),
        compiler_params=pltpu.CompilerParams(
            dimension_semantics=("parallel",),
            vmem_limit_bytes=vmem_limit),
    )(key2d, val2d, wkq3, mask3, colid, wv_pad)

    return out[:B, :OUT_DIM].reshape(B, 1, OUT_DIM)


def attention_ref(key, query, value, mask, wk, wq, wv):
    k = key @ wk
    q = query @ wq
    v = value @ wv
    s = jnp.sum(k * q, axis=-1) / math.sqrt(HIDDEN_DIM) + mask
    p = jax.nn.softmax(s, axis=-1)[..., None]
    return jnp.sum(v * p, axis=1, keepdims=True)


def _run_case(B, ISL, block_rows):
    root = jax.random.PRNGKey(0)
    ks = jax.random.split(root, 8)
    key = jax.random.normal(ks[0], (B, ISL, INPUT_DIM), dtype=jnp.float32)
    query = jax.random.normal(ks[1], (B, 1, OUT_DIM), dtype=jnp.float32)
    value = jax.random.normal(ks[2], (B, ISL, INPUT_DIM), dtype=jnp.float32)
    # additive attention mask: 0 = keep, -1e9 = padded sequence position
    lengths = jax.random.randint(ks[3], (B, 1), 1, ISL + 1)
    mask = jnp.where(jnp.arange(ISL)[None, :] < lengths, 0.0, -1e9).astype(jnp.float32)
    # weights stored as (in_dim, out_dim) == nn.Linear.weight.T
    wk = 0.02 * jax.random.normal(ks[4], (INPUT_DIM, HIDDEN_DIM), dtype=jnp.float32)
    wq = 0.02 * jax.random.normal(ks[5], (OUT_DIM, HIDDEN_DIM), dtype=jnp.float32)
    wv = 0.02 * jax.random.normal(ks[6], (INPUT_DIM, OUT_DIM), dtype=jnp.float32)

    out = jax.block_until_ready(
        attention_pallas(key, query, value, mask, wk, wq, wv, block_rows=block_rows))
    ref = jax.block_until_ready(attention_ref(key, query, value, mask, wk, wq, wv))
    assert out.shape == (B, 1, OUT_DIM), out.shape
    # bf16 streamed operands + f32 accumulation in the kernel vs. pure-f32 ref.
    assert bool(jnp.allclose(out, ref, rtol=2e-2, atol=2e-2)), \
        float(jnp.max(jnp.abs(out - ref)))


if __name__ == "__main__":
    _run_case(B=2, ISL=8, block_rows=2048)   # single grid step, blocks = full dims
    _run_case(B=20, ISL=5, block_rows=64)    # multi-step grid + batch/seq padding
    _run_case(B=20, ISL=8, block_rows=2048)  # large-block path capped so grid >= 2
    print("KERNEL_OK")
</pallas_src>

<mosaic_0001>
module attributes {stable_mosaic.version = 11 : i64} {
  func.func @_attention_kernel(%arg0: i32, %arg1: memref<16x768xbf16, #tpu.memory_space<vmem>>, %arg2: memref<16x768xbf16, #tpu.memory_space<vmem>>, %arg3: memref<1x2x768xbf16, #tpu.memory_space<vmem>>, %arg4: memref<1x1x16xf32, #tpu.memory_space<vmem>>, %arg5: memref<1x16xi32, #tpu.memory_space<vmem>>, %arg6: memref<768x128xbf16, #tpu.memory_space<vmem>>, %arg7: memref<2x128xf32, #tpu.memory_space<vmem>>) attributes {dimension_semantics = [#tpu.dimension_semantics<parallel>], iteration_bounds = array<i64: 1>, scalar_prefetch = 0 : i64, scratch_operands = 0 : i64, tpu.core_type = #tpu.core_type<tc>, window_params = [{transform_indices = @transform_0, window_bounds = array<i64: 16, 768>}, {transform_indices = @transform_1, window_bounds = array<i64: 16, 768>}, {transform_indices = @transform_2, window_bounds = array<i64: 1, 2, 768>}, {transform_indices = @transform_3, window_bounds = array<i64: 1, 1, 16>}, {pipeline_mode = #tpu.pipeline_mode<synchronous>, transform_indices = @transform_4, window_bounds = array<i64: 1, 16>}, {pipeline_mode = #tpu.pipeline_mode<synchronous>, transform_indices = @transform_5, window_bounds = array<i64: 768, 128>}, {transform_indices = @transform_6, window_bounds = array<i64: 2, 128>}]} {
    %c0 = arith.constant 0 : index
    %c0_0 = arith.constant 0 : index
    %c0_1 = arith.constant 0 : index
    %0 = vector.load %arg3[%c0, %c0_0, %c0_1] : memref<1x2x768xbf16, #tpu.memory_space<vmem>>, vector<1x2x768xbf16>
    %1 = vector.shape_cast %0 : vector<1x2x768xbf16> to vector<2x768xbf16>
    %c0_2 = arith.constant 0 : index
    %c0_3 = arith.constant 0 : index
    %2 = vector.load %arg1[%c0_2, %c0_3] : memref<16x768xbf16, #tpu.memory_space<vmem>>, vector<16x768xbf16>
    %cst = arith.constant dense<0.000000e+00> : vector<2x16xf32>
    %3 = tpu.matmul %1, %2, %cst {dimension_numbers = #tpu.dot_dimension_numbers<[1], [1], [0], [0], [0, 0, 1, 0], [], []>} : vector<2x768xbf16>, vector<16x768xbf16>, vector<2x16xf32> -> vector<2x16xf32>
    %c0_4 = arith.constant 0 : index
    %c0_5 = arith.constant 0 : index
    %c0_6 = arith.constant 0 : index
    %4 = vector.load %arg4[%c0_4, %c0_5, %c0_6] : memref<1x1x16xf32, #tpu.memory_space<vmem>>, vector<1x1x16xf32>
    %5 = vector.shape_cast %4 : vector<1x1x16xf32> to vector<1x16xf32>
    %6 = vector.broadcast %5 : vector<1x16xf32> to vector<2x16xf32>
    %7 = arith.addf %3, %6 : vector<2x16xf32>
    %8 = tpu.iota {dimensions = array<i32: 0>} : vector<2x16xi32>
    %c0_7 = arith.constant 0 : index
    %c0_8 = arith.constant 0 : index
    %9 = vector.load %arg5[%c0_7, %c0_8] : memref<1x16xi32, #tpu.memory_space<vmem>>, vector<1x16xi32>
    %10 = vector.broadcast %9 : vector<1x16xi32> to vector<2x16xi32>
    %11 = arith.cmpi eq, %8, %10 : vector<2x16xi32>
    %cst_9 = arith.constant -1.000000e+30 : f32
    %12 = vector.broadcast %cst_9 : f32 to vector<2x16xf32>
    %13 = arith.select %11, %7, %12 : vector<2x16xi1>, vector<2x16xf32>
    %cst_10 = arith.constant dense<0xFF800000> : vector<2xf32>
    %14 = vector.multi_reduction <maximumf>, %13, %cst_10 [1] : vector<2x16xf32> to vector<2xf32>
    %15 = vector.shape_cast %14 : vector<2xf32> to vector<2x1xf32>
    %16 = vector.broadcast %15 : vector<2x1xf32> to vector<2x16xf32>
    %17 = arith.subf %13, %16 : vector<2x16xf32>
    %18 = math.exp %17 : vector<2x16xf32>
    %cst_11 = arith.constant dense<0.000000e+00> : vector<2xf32>
    %19 = vector.multi_reduction <add>, %18, %cst_11 [1] : vector<2x16xf32> to vector<2xf32>
    %20 = vector.shape_cast %19 : vector<2xf32> to vector<2x1xf32>
    %21 = tpu.reciprocal %20 {approx = true} : vector<2x1xf32> -> vector<2x1xf32>
    %22 = vector.broadcast %21 : vector<2x1xf32> to vector<2x16xf32>
    %23 = arith.mulf %18, %22 : vector<2x16xf32>
    %24 = arith.truncf %23 : vector<2x16xf32> to vector<2x16xbf16>
    %c0_12 = arith.constant 0 : index
    %c0_13 = arith.constant 0 : index
    %25 = vector.load %arg2[%c0_12, %c0_13] : memref<16x768xbf16, #tpu.memory_space<vmem>>, vector<16x768xbf16>
    %cst_14 = arith.constant dense<0.000000e+00> : vector<2x768xf32>
    %26 = tpu.matmul %24, %25, %cst_14 {dimension_numbers = #tpu.dot_dimension_numbers<[1], [0], [0], [1], [0, 0, 1, 1], [], []>} : vector<2x16xbf16>, vector<16x768xbf16>, vector<2x768xf32> -> vector<2x768xf32>
    %27 = arith.truncf %26 : vector<2x768xf32> to vector<2x768xbf16>
    %c0_15 = arith.constant 0 : index
    %c0_16 = arith.constant 0 : index
    %28 = vector.load %arg6[%c0_15, %c0_16] : memref<768x128xbf16, #tpu.memory_space<vmem>>, vector<768x128xbf16>
    %cst_17 = arith.constant dense<0.000000e+00> : vector<2x128xf32>
    %29 = tpu.matmul %27, %28, %cst_17 {dimension_numbers = #tpu.dot_dimension_numbers<[1], [0], [0], [1], [0, 0, 1, 1], [], []>} : vector<2x768xbf16>, vector<768x128xbf16>, vector<2x128xf32> -> vector<2x128xf32>
    %c0_18 = arith.constant 0 : index
    %c0_19 = arith.constant 0 : index
    %30 = vector.load %arg7[%c0_18, %c0_19] : memref<2x128xf32, #tpu.memory_space<vmem>>, vector<2x128xf32>
    tpu.vector_store %arg7[%c0_18, %c0_19], %29 {strides = array<i32>} : memref<2x128xf32, #tpu.memory_space<vmem>>, vector<2x128xf32>,
    return
  }
  func.func @transform_0(%arg0: i32) -> (i32, i32) {
    %c0_i32 = arith.constant 0 : i32
    %c0_i32_0 = arith.constant 0 : i32
    return %arg0, %c0_i32 : i32, i32
  }
  func.func @transform_1(%arg0: i32) -> (i32, i32) {
    %c0_i32 = arith.constant 0 : i32
    %c0_i32_0 = arith.constant 0 : i32
    return %arg0, %c0_i32 : i32, i32
  }
  func.func @transform_2(%arg0: i32) -> (i32, i32, i32) {
    %c0_i32 = arith.constant 0 : i32
    %c0_i32_0 = arith.constant 0 : i32
    %c0_i32_1 = arith.constant 0 : i32
    return %arg0, %c0_i32, %c0_i32_0 : i32, i32, i32
  }
  func.func @transform_3(%arg0: i32) -> (i32, i32, i32) {
    %c0_i32 = arith.constant 0 : i32
    %c0_i32_0 = arith.constant 0 : i32
    %c0_i32_1 = arith.constant 0 : i32
    return %arg0, %c0_i32, %c0_i32_0 : i32, i32, i32
  }
  func.func @transform_4(%arg0: i32) -> (i32, i32) {
    %c0_i32 = arith.constant 0 : i32
    %c0_i32_0 = arith.constant 0 : i32
    %c0_i32_1 = arith.constant 0 : i32
    return %c0_i32, %c0_i32_0 : i32, i32
  }
  func.func @transform_5(%arg0: i32) -> (i32, i32) {
    %c0_i32 = arith.constant 0 : i32
    %c0_i32_0 = arith.constant 0 : i32
    %c0_i32_1 = arith.constant 0 : i32
    return %c0_i32, %c0_i32_0 : i32, i32
  }
  func.func @transform_6(%arg0: i32) -> (i32, i32) {
    %c0_i32 = arith.constant 0 : i32
    %c0_i32_0 = arith.constant 0 : i32
    return %arg0, %c0_i32 : i32, i32
  }
}

</mosaic_0001>

<bundles_post_ra>
// kernel: tpu_custom_call.1
= control target key start
LH: loop header
LB: loop body
LE: loop exit
PB: predicated region body
PF: predicated region fallthrough
CT: control target
= control target key end

     0   :  { %11 = vsyncpa [#allocation3], 0  ;;  %s1400_s0 = inlined_call_operand.hbm [shape: bf16[16,768], index: 0, kind: input, shape index: {}]   ;;  %s1401_s1 = inlined_call_operand.hbm [shape: bf16[16,768], index: 1, kind: input, shape index: {}]   ;;  %s1402_s2 = inlined_call_operand.hbm [shape: bf16[1,2,768], index: 2, kind: input, shape index: {}]   ;;  %s1403_s3 = inlined_call_operand.vmem [shape: f32[1,1,16], index: 3, kind: input, shape index: {}]   ;;  %s1404_s4 = inlined_call_operand.vmem [shape: s32[1,16], index: 4, kind: input, shape index: {}]   ;;  %s1405_s5 = inlined_call_operand.hbm [shape: bf16[768,128], index: 5, kind: input, shape index: {}]   ;;  %s1406_s6 = inlined_call_operand.hbm [shape: f32[2,128], index: 6, kind: output, shape index: {}]  }
   0x1   :  { %12 = vsyncpa [#allocation6], 0 }
   0x2   :  { %13 = vsyncpa [#allocation9], 0 }
   0x3   :  { %14 = vsyncpa [#allocation4], 0  ;;  %s1330_s21 = smov [#allocation5]   ;;  %s1331_s23 = smov [#allocation2]  }
   0x4   :  { %s32_s22 = sshll.u32 %s1330_s21, 4  ;;  %s20_s24 = sshll.u32 %s1331_s23, 4  ;;  %s33_s22 = int_to_ptr.vmem [resolvable:$true] %s32_s22  ;;  %s21_s24 = int_to_ptr.vmem [resolvable:$true] %s20_s24 }
   0x5   :  { %s1230_s25 = scalar_lea.vmem %s33_s22, 768  ;;  %p1235_p1 = scmp.lt.s32.totalorder %s33_s22, %s33_s22 }
   0x6   :  { %p1231_p0 = scmp.ne.s32.totalorder %s33_s22, %s1230_s25  ;;  %p1236_p2 = scmp.lt.s32.totalorder %s1230_s25, %s1230_s25 }
   0x8   :  { %p1237_p3 = por %p1236_p2, %p1235_p1 }
   0xa   :  { %p1238_p4 = pnand %p1237_p3, %p1231_p0 }
   0xc   :  { %1241 = shalt.err (!%p1238_p4)
}
   0xd   :  { %s1332_s26 = smov 384   ;;  %s1333_s27 = smov 24  }
   0xe   :  { %38 = dma.hbm_to_vmem [thread:$0]  %s1401_s1, 768, %s33_s22, [#allocation6], %s1332_s26, %s1332_s26, %s1333_s27  }
   0xf   :  { %s1250_s30 = scalar_lea.vmem %s21_s24, 768  ;;  %p1255_p6 = scmp.lt.s32.totalorder %s21_s24, %s21_s24 }
  0x10   :  { %p1251_p5 = scmp.ne.s32.totalorder %s21_s24, %s1250_s30  ;;  %p1256_p7 = scmp.lt.s32.totalorder %s1250_s30, %s1250_s30 }
  0x12   :  { %p1257_p8 = por %p1256_p7, %p1255_p6 }
  0x14   :  { %p1258_p9 = pnand %p1257_p8, %p1251_p5 }
  0x16   :  { %1261 = shalt.err (!%p1258_p9)
}
  0x17   :  { %26 = dma.hbm_to_vmem [thread:$0]  %s1400_s0, 768, %s21_s24, [#allocation3], %s1332_s26, %s1332_s26, %s1333_s27  }
  0x18   :  { %s1334_s9 = smov [#allocation7]   ;;  %s1335_s11 = smov [#allocation8]  }
  0x19   :  { %s45_s10 = sshll.u32 %s1334_s9, 4  ;;  %s58_s12 = sshll.u32 %s1335_s11, 4  ;;  %s46_s10 = int_to_ptr.vmem [resolvable:$true] %s45_s10  ;;  %s59_s12 = int_to_ptr.vmem [resolvable:$true] %s58_s12 }
  0x1a   :  { %s1270_s13 = scalar_lea.vmem %s46_s10, 96  ;;  %p1275_p11 = scmp.lt.s32.totalorder %s46_s10, %s46_s10 }
  0x1b   :  { %p1271_p10 = scmp.ne.s32.totalorder %s46_s10, %s1270_s13  ;;  %p1276_p12 = scmp.lt.s32.totalorder %s1270_s13, %s1270_s13 }
  0x1d   :  { %p1277_p13 = por %p1276_p12, %p1275_p11 }
  0x1f   :  { %p1278_p0 = pnand %p1277_p13, %p1271_p10 }
  0x21   :  { %1281 = shalt.err (!%p1278_p0)
}
  0x22   :  { %48 = dma.hbm_to_vmem [thread:$0]  %s1402_s2, 96, %s46_s10, [#allocation6]  }
  0x23   :  { %s1290_s15 = scalar_lea.vmem %s59_s12, 6144  ;;  %p1295_p2 = scmp.lt.s32.totalorder %s59_s12, %s59_s12 }
  0x24   :  { %p1291_p1 = scmp.ne.s32.totalorder %s59_s12, %s1290_s15  ;;  %p1296_p3 = scmp.lt.s32.totalorder %s1290_s15, %s1290_s15 }
  0x26   :  { %p1297_p4 = por %p1296_p3, %p1295_p2 }
  0x28   :  { %p1298_p5 = pnand %p1297_p4, %p1291_p1 }
  0x2a   :  { %1301 = shalt.err (!%p1298_p5)
}
  0x2b   :  { %s1336_s0 = smov 64   ;;  %s1337_s16 = smov 4  }
  0x2c   :  { %64 = dma.hbm_to_vmem [thread:$0]  %s1405_s5, 6144, %s59_s12, [#allocation9], %s1336_s0, %s1336_s0, %s1337_s16  }
  0x2d   :  { %1322 = dma.done.wait [#allocation3], 768  }
  0x2e   :  { %1323 = vsyncadd [#allocation3], 4294966528 }
  0x2f   :  { %1324 = dma.done.wait [#allocation6], 864  }
  0x30   :  { %1325 = vsyncadd [#allocation6], 4294966432 }
  0x31   :  { %1326 = dma.done.wait [#allocation9], 6144  }
  0x32   :  { %1327 = vsyncadd [#allocation9], 4294961152  ;;  %v97_v0 = vlaneseq  ;;  %v1338_v1 = vmov 1966171168   ;;  %v1151_v6 = vld [vmem:[#allocation2 + $0x4] ss:$24 sps:$4 sm:$0xff]  }
  0x33   :  { %v95_v2 = vunpack.c.l.s4 %v1338_v1  ;;  %v1153_v7 = vld [vmem:[#allocation2] ss:$24 sps:$4 sm:$0xff]   ;;  %190 = vmatprep.subr.bf16.mxu1 %v1151_v6  ;;  %v1157_v10 = vld [vmem:[#allocation2 + $0xc] ss:$24 sps:$4 sm:$0xff]   ;;  %v1158_v20 = vld [vmem:[#allocation2 + $0x10] ss:$24 sps:$4 sm:$0xff]  }
  0x34   :  { %v98_v3 = vshrl.u32 %v97_v0, 7  ;;  %v78_v8 = vld [vmem:[#allocation7] sm:$0x3f]  ;;  %191 = vmatpush1.bf16.xpose.msra.mxu1 %v1153_v7  ;;  %v1160_v16 = vld [vmem:[#allocation2 + $0x14] ss:$24 sps:$4 sm:$0xff]   ;;  %vm305_vm1 = vcmask 123904  }
  0x35   :  { %v96_v4 = vunpack.c.0.s8 %v95_v2  ;;  %v93_v11 = vcombine.high %v78_v8, %v78_v8  ;;  %230 = vmatprep.subr.bf16.mxu1 %v1157_v10  ;;  %v1155_v13 = vld [vmem:[#allocation2 + $0x8] ss:$24 sps:$4 sm:$0xff]   ;;  %v1163_v49 = vld [vmem:[#allocation5 + $0x4] ss:$24 sps:$4 sm:$0xff]   ;;  %v1166_v51 = vld [vmem:[#allocation5 + $0x8] ss:$24 sps:$4 sm:$0xff]  }
  0x36   :  { %v1009_v29 = vld [vmem:[%s1403_s3] ss:$0 sm:$0xff]  ;;  %v1161_v48 = vld [vmem:[#allocation5] ss:$24 sps:$4 sm:$0xff]   ;;  %v1164_v50 = vld [vmem:[#allocation5 + $0xc] ss:$24 sps:$4 sm:$0xff]  }
  0x37   :  { %v99_v5 = vsub.s32 %v96_v4, %v98_v3  ;;  %v1016_v33 = vld [vmem:[%s1404_s4] ss:$0 sm:$0xff]  ;;  %413 = vmatprep.subr.bf16.mxu0 %v1164_v50  ;;  %v1339_v52 = vmov 0   ;;  %v1169_v53 = vld [vmem:[#allocation5 + $0x14] ss:$24 sps:$4 sm:$0xff]   ;;  %vm354_vm2 = vcmask 130048  }
  0x38   :  { %vm303_vm0 = vcmp.eq.s32.totalorder %v98_v3, %v1016_v33  ;;  %414 = vmatpush1.bf16.msra.mxu0 %v1166_v51  ;;  %431 = vmatprep.mubr.bf16.mxu0 %v1339_v52  ;;  %v1170_v54 = vld [vmem:[#allocation8 + $0x78] sm:$0xff]   ;;  %v1174_v62 = vld [vmem:[#allocation8 + $0x70] sm:$0xff]   ;;  %v1178_v0 = vld [vmem:[#allocation8 + $0x68] sm:$0xff]   ;;  %s1340_s3 = smov [#allocation10]  }
  0x39   :  { %v100_v9 = vrot.slane %v78_v8, %v99_v5  ;;  %v107_v17 = vrot.slane %v93_v11, %v99_v5  ;;  %1074 = vmatprep.subr.bf16.mxu0 %v1170_v54  ;;  %v1167_v58 = vld [vmem:[#allocation5 + $0x10] ss:$24 sps:$4 sm:$0xff]   ;;  %v1179_v3 = vld [vmem:[#allocation8 + $0x28] sm:$0xff]   ;;  %v1182_v4 = vld [vmem:[#allocation8 + $0x60] sm:$0xff]   ;;  %s998_s4 = sshll.u32 %s1340_s3, 4  ;;  %s999_s4 = int_to_ptr.vmem [resolvable:$true] %s998_s4 }
  0x3a   :  { %v1171_v60 = vld [vmem:[#allocation8 + $0x38] sm:$0xff]   ;;  %v1175_v63 = vld [vmem:[#allocation8 + $0x30] sm:$0xff]   ;;  %v1180_v6 = vld [vmem:[#allocation8 + $0xe8] sm:$0xff]   ;;  %s1302_s21 = scalar_lea.vmem %s999_s4, 32  ;;  %p1307_p7 = scmp.lt.s32.totalorder %s999_s4, %s999_s4 }
  0x3b   :  { %v108_v12 = vcombine.high %v100_v9, %v100_v9  ;;  %v116_v15 = vrot.slane %v100_v9, %v99_v5  ;;  %v109_v19 = vcombine.high %v107_v17, %v107_v17  ;;  %v123_v23 = vrot.slane %v107_v17, %v99_v5  ;;  %v1172_v61 = vld [vmem:[#allocation8 + $0xf8] sm:$0xff]   ;;  %v1176_v2 = vld [vmem:[#allocation8 + $0xf0] sm:$0xff]   ;;  %v1183_v7 = vld [vmem:[#allocation8 + $0x20] sm:$0xff]   ;;  %p1303_p6 = scmp.ne.s32.totalorder %s999_s4, %s1302_s21  ;;  %p1308_p8 = scmp.lt.s32.totalorder %s1302_s21, %s1302_s21 }
  0x3c   :  { %v1173_v1 = vld [vmem:[#allocation8 + $0xb8] sm:$0xff]   ;;  %v1181_v9 = vld [vmem:[#allocation8 + $0xa8] sm:$0xff]   ;;  %v1184_v10 = vld [vmem:[#allocation8 + $0xe0] sm:$0xff]  }
  0x3d   :  { %v130_v14 = vrot.slane %v108_v12, %v99_v5  ;;  %v138_v21 = vcombine.high %v116_v15, %v116_v15  ;;  %v137_v22 = vrot.slane %v109_v19, %v99_v5  ;;  %v1177_v5 = vld [vmem:[#allocation8 + $0xb0] sm:$0xff]   ;;  %v1186_v8 = vld [vmem:[#allocation8 + $0x58] sm:$0xff]   ;;  %v1195_v19 = vld [vmem:[#allocation8 + $0x8] sm:$0xff]   ;;  %p1309_p9 = por %p1308_p8, %p1307_p7 }
  0x3e   :  { %v1187_v11 = vld [vmem:[#allocation8 + $0x18] sm:$0xff]   ;;  %v1190_v12 = vld [vmem:[#allocation8 + $0x50] sm:$0xff]   ;;  %v1209_v51 = vld [vmem:[#allocation8 + $0x120] sm:$0xff]  }
  0x3f   :  { %v139_v18 = vcombine.high %v130_v14, %v130_v14  ;;  %208 = vmatprep.mubr.bf16.mxu1 %v130_v14  ;;  %v1188_v14 = vld [vmem:[#allocation8 + $0xd8] sm:$0xff]   ;;  %v1212_v54 = vld [vmem:[#allocation8 + $0x150] sm:$0xff]   ;;  %p1310_p10 = pnand %p1309_p9, %p1303_p6 }
  0x40   :  { %209 = vmatmul.mubr.bf16.vlgmr.msra.gmra.mxu1 %v116_v15  ;;  %v1191_v15 = vld [vmem:[#allocation8 + $0x10] sm:$0xff]   ;;  %v1189_v17 = vld [vmem:[#allocation8 + $0x98] sm:$0xff]  }
  0x41   :  { %231 = vmatpush1.bf16.xpose.msra.mxu1 %v1155_v13  ;;  %248 = vmatprep.mubr.bf16.mxu1 %v139_v18  ;;  %v1185_v13 = vld [vmem:[#allocation8 + $0xa0] sm:$0xff]   ;;  %v1192_v18 = vld [vmem:[#allocation8 + $0xd0] sm:$0xff]  }
  0x42   :  { %270 = vmatprep.subr.bf16.mxu1 %v1160_v16  ;;  %v1194_v16 = vld [vmem:[#allocation8 + $0x48] sm:$0xff]  }
  0x48   :  { %249 = vmatmul.mubr.bf16.vlgmr.msra.gmra.mxu1 %v138_v21  ;;  %v1196_v21 = vld [vmem:[#allocation8 + $0xc8] sm:$0xff]  }
  0x49   :  { %271 = vmatpush1.bf16.xpose.msra.mxu1 %v1158_v20  ;;  %288 = vmatprep.mubr.bf16.mxu1 %v137_v22  ;;  %v1193_v20 = vld [vmem:[#allocation8 + $0x90] sm:$0xff]   ;;  %v1197_v22 = vld [vmem:[#allocation8 + $0x88] sm:$0xff]  }
  0x4a   :  { %372 = vmatprep.subr.bf16.mxu1 %v1163_v49  ;;  %v1208_v49 = vld [vmem:[#allocation8 + $0x160] sm:$0xff]  }
  0x50   :  { %289 = vmatmul.mubr.bf16.vlgmr.msra.gmra.mxu1 %v123_v23  ;;  %v1198_v23 = vld [vmem:[#allocation8 + $0x40] sm:$0xff]  }
  0x51   :  { %373 = vmatpush1.bf16.msra.mxu1 %v1161_v48  ;;  %390 = vmatprep.mubr.bf16.mxu1 %v1339_v52 }
  0x52   :  { %454 = vmatprep.subr.bf16.mxu1 %v1169_v53  ;;  %v1211_v53 = vld [vmem:[#allocation8 + $0x118] sm:$0xff]  }
 0x100   :  { %v210_v24 = vpop.f32.mrf.mxu1 }
 0x101   :  { %v211_v32 = vadd.f32 %v1009_v29, %v210_v24  ;;  %v1199_v24 = vld [vmem:[#allocation8] sm:$0xff]  }
 0x102   :  { %v212_v25 = vpop.f32.mrf.mxu1 }
 0x103   :  { %v1200_v25 = vld [vmem:[#allocation8 + $0xc0] sm:$0xff]  }
 0x104   :  { %v213_v26 = vpop.f32.mrf.mxu1 }
 0x105   :  { %v1201_v26 = vld [vmem:[#allocation8 + $0x80] sm:$0xff]  }
 0x106   :  { %v214_v27 = vpop.f32.mrf.mxu1 }
 0x107   :  { %v1202_v27 = vld [vmem:[#allocation8 + $0x178] sm:$0xff]  }
 0x108   :  { %v250_v28 = vpop.f32.mrf.mxu1 }
 0x109   :  { %v251_v35 = vadd.f32 %v250_v28, %v211_v32 }
 0x10a   :  { %v252_v30 = vpop.f32.mrf.mxu1 }
 0x10c   :  { %v253_v31 = vpop.f32.mrf.mxu1 }
 0x10e   :  { %v254_v34 = vpop.f32.mrf.mxu1 }
 0x10f   :  { %v1203_v34 = vld [vmem:[#allocation8 + $0x138] sm:$0xff]  }
 0x110   :  { %v290_v36 = vpop.f32.mrf.mxu1 }
 0x111   :  { %v291_v37 = vadd.f32 %v290_v36, %v251_v35 }
 0x112   :  { %v292_v38 = vpop.f32.mrf.mxu1 }
 0x113   :  { %v304_v39 = vsel %vm303_vm0, %v291_v37, -1e+30 }
 0x114   :  { %v293_v40 = vpop.f32.mrf.mxu1  ;;  %v306_v41 = vsel %vm305_vm1, %v304_v39, -inf }
 0x115   :  { %307 = vmax.xlane.f32.xlu0 %v306_v41 }
 0x116   :  { %v294_v42 = vpop.f32.mrf.mxu1 }
 0x117   :  { %v1205_v42 = vld [vmem:[#allocation8 + $0x130] sm:$0xff]  }
 0x19e   :  { %v308_v43 = vpop.xlane.xlu0 %307 }
 0x19f   :  { %v309_v44 = vsub.f32 %v304_v39, %v308_v43  ;;  %v1204_v39 = vld [vmem:[#allocation8 + $0x170] sm:$0xff]  }
 0x1a1   :  { %v310_v45 = vmul.f32 1.442695, %v309_v44  ;;  %v1206_v44 = vld [vmem:[#allocation8 + $0x168] sm:$0xff]  }
 0x1a3   :  { %1218 = vpow2.f32 %v310_v45 }
 0x1b0   :  { %v1219_v46 = vpop.eup %1218 }
 0x1b1   :  { %v312_v47 = vsel %vm305_vm1, %v1219_v46, 0.0 }
 0x1b2   :  { %313 = vadd.xlane.f32.xlu0 %v312_v47  ;;  %v1207_v47 = vld [vmem:[#allocation8 + $0x128] sm:$0xff]  }
 0x23b   :  { %v314_v55 = vpop.xlane.xlu0 %313 }
 0x23c   :  { %1220 = vrcp.f32 %v314_v55  ;;  %v1213_v55 = vld [vmem:[#allocation8 + $0x110] sm:$0xff]  }
 0x249   :  { %v1221_v56 = vpop.eup %1220 }
 0x24a   :  { %v316_v57 = vmul.f32 %v1221_v56, %v1219_v46  ;;  %v1214_v56 = vld [vmem:[#allocation8 + $0x148] sm:$0xff]  }
 0x24c   :  { %v317_v59 = vpack.c.bf16 %v316_v57, %v316_v57  ;;  %v1215_v57 = vld [vmem:[#allocation8 + $0x108] sm:$0xff]  }
 0x24e   :  { %1023 = vmatmul.mubr.msk.bf16.vlgmr.msra.gmra.mxu1 %vm354_vm2, %v317_v59  ;;  %1024 = vmatmul.mubr.msk.bf16.vlgmr.msra.gmra.mxu0 %vm354_vm2, %v317_v59 }
 0x24f   :  { %455 = vmatpush1.bf16.msra.mxu1 %v1167_v58  ;;  %472 = vmatprep.mubr.bf16.mxu1 %v1339_v52  ;;  %v1210_v52 = vld [vmem:[#allocation8 + $0x158] sm:$0xff]   ;;  %v1216_v58 = vld [vmem:[#allocation8 + $0x140] sm:$0xff]  }
 0x250   :  { %1075 = vmatpush3.bf16.msra.mxu0 %v1171_v60  ;;  %1096 = vmatprep.subr.bf16.mxu1 %v1172_v61 }
 0x251   :  { %1076 = vmatprep.subr.bf16.mxu0 %v1174_v62 }
 0x254   :  { %1077 = vmatpush3.bf16.msra.mxu0 %v1175_v63 }
 0x255   :  { %1078 = vmatprep.subr.bf16.mxu0 %v1178_v0 }
 0x256   :  { %1025 = vmatmul.mubr.msk.bf16.vlgmr.msra.gmra.mxu1 %vm354_vm2, %v317_v59  ;;  %v1217_v59 = vld [vmem:[#allocation8 + $0x100] sm:$0xff]  }
 0x257   :  { %1097 = vmatpush3.bf16.msra.mxu1 %v1173_v1 }
 0x258   :  { %1098 = vmatprep.subr.bf16.mxu1 %v1176_v2  ;;  %1079 = vmatpush3.bf16.msra.mxu0 %v1179_v3 }
 0x259   :  { %1080 = vmatprep.subr.bf16.mxu0 %v1182_v4 }
 0x25b   :  { %1099 = vmatpush3.bf16.msra.mxu1 %v1177_v5 }
 0x25c   :  { %1100 = vmatprep.subr.bf16.mxu1 %v1180_v6  ;;  %1081 = vmatpush3.bf16.msra.mxu0 %v1183_v7 }
 0x25d   :  { %1082 = vmatprep.subr.bf16.mxu0 %v1186_v8 }
 0x25f   :  { %1101 = vmatpush3.bf16.msra.mxu1 %v1181_v9 }
 0x260   :  { %1102 = vmatprep.subr.bf16.mxu1 %v1184_v10  ;;  %1083 = vmatpush3.bf16.msra.mxu0 %v1187_v11 }
 0x261   :  { %1084 = vmatprep.subr.bf16.mxu0 %v1190_v12 }
 0x263   :  { %1103 = vmatpush3.bf16.msra.mxu1 %v1185_v13 }
 0x264   :  { %1104 = vmatprep.subr.bf16.mxu1 %v1188_v14  ;;  %1085 = vmatpush3.bf16.msra.mxu0 %v1191_v15 }
 0x265   :  { %1086 = vmatprep.subr.bf16.mxu0 %v1194_v16 }
 0x267   :  { %1105 = vmatpush3.bf16.msra.mxu1 %v1189_v17 }
 0x268   :  { %1106 = vmatprep.subr.bf16.mxu1 %v1192_v18  ;;  %1087 = vmatpush3.bf16.msra.mxu0 %v1195_v19 }
 0x269   :  { %1088 = vmatprep.subr.bf16.mxu0 %v1198_v23 }
 0x26b   :  { %1107 = vmatpush3.bf16.msra.mxu1 %v1193_v20 }
 0x26c   :  { %1108 = vmatprep.subr.bf16.mxu1 %v1196_v21  ;;  %1089 = vmatpush3.bf16.msra.mxu0 %v1199_v24 }
 0x26d   :  { %1118 = vmatprep.subr.bf16.mxu0 %v1202_v27 }
 0x26f   :  { %1109 = vmatpush3.bf16.msra.mxu1 %v1197_v22 }
 0x270   :  { %1110 = vmatprep.subr.bf16.mxu1 %v1200_v25 }
 0x273   :  { %1111 = vmatpush3.bf16.msra.mxu1 %v1201_v26 }
 0x30e   :  { %v392_v28 = vpop.f32.mrf.mxu1  ;;  %v433_v29 = vpop.f32.mrf.mxu0 }
 0x30f   :  { %v481_v35 = vpack.c.bf16 %v392_v28, %v392_v28  ;;  %v483_v36 = vpack.c.bf16 %v433_v29, %v433_v29 }
 0x310   :  { %v394_v30 = vpop.f32.mrf.mxu1  ;;  %v435_v31 = vpop.f32.mrf.mxu0 }
 0x311   :  { %v482_v32 = vpack.c.bf16 %v394_v30, %v394_v30  ;;  %v484_v33 = vpack.c.bf16 %v435_v31, %v435_v31 }
 0x312   :  { %v396_v37 = vpop.f32.mrf.mxu1  ;;  %v437_v38 = vpop.f32.mrf.mxu0 }
 0x313   :  { %903 = vmatprep.mubr.bf16.mxu0 %v482_v32  ;;  %943 = vmatprep.mubr.bf16.mxu1 %v484_v33 }
 0x314   :  { %v397_v40 = vpop.f32.mrf.mxu1  ;;  %v438_v41 = vpop.f32.mrf.mxu0  ;;  %904 = vmatmul.mubr.bf16.vlgmr.msra.gmra.mxu0 %v481_v35  ;;  %944 = vmatmul.mubr.bf16.vlgmr.msra.gmra.mxu1 %v483_v36 }
 0x315   :  { %1119 = vmatpush3.bf16.msra.mxu0 %v1203_v34 }
 0x316   :  { %v474_v43 = vpop.f32.mrf.mxu1  ;;  %1120 = vmatprep.subr.bf16.mxu0 %v1204_v39 }
 0x317   :  { %v485_v60 = vpack.c.bf16 %v474_v43, %v474_v43 }
 0x318   :  { %v476_v45 = vpop.f32.mrf.mxu1 }
 0x319   :  { %v486_v46 = vpack.c.bf16 %v476_v45, %v476_v45  ;;  %1121 = vmatpush3.bf16.msra.mxu0 %v1205_v42 }
 0x31a   :  { %v478_v48 = vpop.f32.mrf.mxu1  ;;  %1122 = vmatprep.subr.bf16.mxu0 %v1206_v44 }
 0x31b   :  { %983 = vmatprep.mubr.bf16.mxu0 %v486_v46 }
 0x31c   :  { %v479_v50 = vpop.f32.mrf.mxu1 }
 0x31d   :  { %1123 = vmatpush3.bf16.msra.mxu0 %v1207_v47 }
 0x31e   :  { %1124 = vmatprep.subr.bf16.mxu0 %v1208_v49 }
 0x321   :  { %1125 = vmatpush3.bf16.msra.mxu0 %v1209_v51 }
 0x322   :  { %1126 = vmatprep.subr.bf16.mxu0 %v1210_v52 }
 0x325   :  { %1127 = vmatpush3.bf16.msra.mxu0 %v1211_v53 }
 0x326   :  { %1128 = vmatprep.subr.bf16.mxu0 %v1212_v54 }
 0x329   :  { %1129 = vmatpush3.bf16.msra.mxu0 %v1213_v55 }
 0x32a   :  { %1130 = vmatprep.subr.bf16.mxu0 %v1214_v56 }
 0x32d   :  { %1131 = vmatpush3.bf16.msra.mxu0 %v1215_v57 }
 0x32e   :  { %1132 = vmatprep.subr.bf16.mxu0 %v1216_v58 }
 0x331   :  { %1133 = vmatpush3.bf16.msra.mxu0 %v1217_v59 }
 0x334   :  { %984 = vmatmul.mubr.bf16.vlgmr.msra.gmra.mxu0 %v485_v60 }
 0x3d4   :  { %v1090_v61 = vpop.f32.mrf.mxu0  ;;  %v1112_v62 = vpop.f32.mrf.mxu1 }
 0x3d6   :  { %v1091_v63 = vpop.f32.mrf.mxu0  ;;  %v1113_v0 = vpop.f32.mrf.mxu1 }
 0x3d7   :  { %v1092_v5 = vadd.f32 %v1091_v63, %v1090_v61  ;;  %v1114_v6 = vadd.f32 %v1113_v0, %v1112_v62 }
 0x3d8   :  { %v1093_v1 = vpop.f32.mrf.mxu0  ;;  %v1115_v2 = vpop.f32.mrf.mxu1 }
 0x3d9   :  { %v946_v9 = vadd.f32 %v1114_v6, %v1092_v5 }
 0x3da   :  { %v1094_v3 = vpop.f32.mrf.mxu0  ;;  %v1116_v4 = vpop.f32.mrf.mxu1 }
 0x3f4   :  { %v1134_v7 = vpop.f32.mrf.mxu0 }
 0x3f6   :  { %v1135_v8 = vpop.f32.mrf.mxu0 }
 0x3f7   :  { %v1136_v10 = vadd.f32 %v1135_v8, %v1134_v7 }
 0x3f8   :  { %v1137_v11 = vpop.f32.mrf.mxu0 }
 0x3f9   :  { %v986_v12 = vadd.f32 %v1136_v10, %v946_v9 }
 0x3fa   :  { %v1138_v13 = vpop.f32.mrf.mxu0 }
 0x3fb   :  { %991 = vst [vmem:[#allocation10] sm:$0x3] %v986_v12 }
 0x3fc   :  { %1313 = shalt.err (!%p1310_p10)
}
 0x3fd   :  { %1001 = dma.vmem_to_hbm [thread:$0]  %s999_s4, 32, %s1406_s6, [#allocation4]  }
 0x3fe   :  { %1328 = dma.done.wait [#allocation4], 32  }
 0x3ff   :  { %1329 = vsyncadd [#allocation4], 4294967264 }
 0x400   :  { %1005 = vsyncpa [#allocation3], 1 }
 0x401   :  { %1006 = vsyncpa [#allocation6], 1 }
 0x402   :  { %1007 = vsyncpa [#allocation9], 1 }
 0x403   :  { %1008 = vsyncpa [#allocation4], 1 }

</bundles_post_ra>
